<compile_context>
chip_gen: v5e
topology: v5e:2x2
jax: 0.10.0
libtpu: 0.0.40
codegen_flags: <defaults>
</compile_context>

<pallas_src>
import functools

import jax
import jax.numpy as jnp
from jax.experimental import pallas as pl
from jax.experimental.pallas import tpu as pltpu

LANE = 128
# TODO(synk): for real TCN widths (>=256 channels) pad to 256 on v6e/v7x
# (2x256x256 MXU); 128 is the native width on v5e and is used here since the
# demo channel counts are 4-16.


def _round_up(x, m):
    return (x + m - 1) // m * m


# ----------------------------------------------------------------------------
# Fully fused SimpleConvNet kernel
# ----------------------------------------------------------------------------
def _fused_tcn_kernel(x_ref, *refs, block_meta):
    """Whole SimpleConvNet on one (TR, C_pad) row tile.

    x_ref : (TR, C0_pad) bf16
    per block (in order): w1 (Cin_pad, W1) bf16, b1 (1, W1) f32,
                          w2 (Cout_pad, Cout_pad) bf16, b2 (1, Cout_pad) f32,
      where W1 = Cout_pad (identity residual) or 2*Cout_pad (conv1 | downsample
      concatenated column-wise at prep time).
    o_ref : (TR, Clast_pad) bf16
    Dropout is identity at inference -> omitted.
    """
    o_ref = refs[-1]
    prefs = refs[:-1]

    x = x_ref[...]                                              # (TR, C0_pad) bf16
    idx = 0
    for c_out_pad, has_ds in block_meta:
        w1, b1, w2, b2 = prefs[idx:idx + 4]
        idx += 4

        # conv1 (+ optional 1x1 downsample fused into the same MXU pass)
        h = jnp.dot(x, w1[...], preferred_element_type=jnp.float32) + b1[...]
        if has_ds:
            h1 = jnp.maximum(h[:, :c_out_pad], 0.0)             # relu1
            res = h[:, c_out_pad:]                              # downsample path
        else:
            h1 = jnp.maximum(h, 0.0)                            # relu1
            res = x.astype(jnp.float32)                         # identity residual

        # conv2 + relu2
        h2 = jnp.dot(h1.astype(jnp.bfloat16), w2[...],
                     preferred_element_type=jnp.float32) + b2[...]
        h2 = jnp.maximum(h2, 0.0)

        # residual add + final relu; bf16 hand-off to next block
        x = jnp.maximum(h2 + res, 0.0).astype(jnp.bfloat16)

    o_ref[...] = x


def _pick_row_tile(rows, c0_pad, clast_pad, max_w_pad, weight_bytes,
                   budget_bytes=40 * 1024 * 1024):
    """Largest power-of-two row tile (>=16, bf16 sublane packing) that fits the
    VMEM budget and still leaves >= 2 grid programs when there is enough work
    (so both v7x TensorCores are used via dimension_semantics=parallel)."""
    # Per-row footprint: double-buffered bf16 in/out tiles + ~4 f32 temporaries
    # at the widest padded channel count inside the body.
    per_row = 2 * 2 * (c0_pad + clast_pad) + 4 * 4 * max_w_pad
    avail = max(budget_bytes - 2 * weight_bytes, 16 * per_row)
    cap = avail // per_row
    tr = 2048
    while tr > 16 and tr > cap:
        tr //= 2
    while tr > 16 and rows <= tr:
        tr //= 2
    return max(16, tr)


def fused_simple_convnet(x_rows, blocks, rows_true):
    """x_rows: (R, C0_pad) bf16 flattened rows. Returns (R_pad, Clast_pad) bf16."""
    rows, c0_pad = x_rows.shape
    clast_pad = blocks[-1]["c_out_pad"]

    weight_arrays = []
    for b in blocks:
        weight_arrays += [b["w1"], b["b1"], b["w2"], b["b2"]]
    weight_bytes = sum(int(a.size) * a.dtype.itemsize for a in weight_arrays)
    max_w_pad = max([c0_pad] + [b["w1"].shape[1] for b in blocks])

    tr = _pick_row_tile(rows, c0_pad, clast_pad, max_w_pad, weight_bytes)
    rows_pad = _round_up(rows, tr)
    if rows_pad != rows:
        x_rows = jnp.pad(x_rows, ((0, rows_pad - rows), (0, 0)))
    grid = (rows_pad // tr,)

    in_specs = [pl.BlockSpec((tr, c0_pad), lambda i: (i, 0))]
    for arr in weight_arrays:
        in_specs.append(pl.BlockSpec(arr.shape, lambda i: (0, 0)))  # constant index
    out_spec = pl.BlockSpec((tr, clast_pad), lambda i: (i, 0))

    block_meta = tuple((b["c_out_pad"], b["has_ds"]) for b in blocks)

    # Advisory cost estimate: true (unpadded) channels for flops, each weight /
    # bias transferred once (constant block index), activations once each way.
    flops = 0
    for b in blocks:
        ci, co = b["c_in"], b["c_out"]
        flops += 2 * rows_true * co * (ci + co + (ci if b["has_ds"] else 0))
    bytes_accessed = (int(x_rows.size) * 2 + rows_pad * clast_pad * 2
                      + weight_bytes)

    # VMEM limit: estimated per-step footprint with 2x headroom, clamped to
    # [32 MiB, 48 MiB] (safe under v7x's 64 MiB/TC, lifts the conservative
    # default on v5e/v6e's 128 MiB parts).
    per_step = (2 * tr * (c0_pad + clast_pad) * 2        # double-buffered in/out
                + 4 * tr * max_w_pad * 4                 # f32 temporaries
                + 2 * weight_bytes)                      # (double-buffered) weights
    vmem_limit = int(min(48 * 1024 * 1024, max(32 * 1024 * 1024, 2 * per_step)))

    return pl.pallas_call(
        functools.partial(_fused_tcn_kernel, block_meta=block_meta),
        out_shape=jax.ShapeDtypeStruct((rows_pad, clast_pad), jnp.bfloat16),
        grid=grid,
        in_specs=in_specs,
        out_specs=out_spec,
        compiler_params=pltpu.CompilerParams(
            dimension_semantics=("parallel",),
            vmem_limit_bytes=vmem_limit,
        ),
        cost_estimate=pl.CostEstimate(
            flops=int(flops), transcendentals=0,
            bytes_accessed=int(bytes_accessed)),
    )(x_rows, *weight_arrays)


# ----------------------------------------------------------------------------
# Parameter construction (deterministic, synthetic) + weight_norm glue
# ----------------------------------------------------------------------------
def _weight_norm_params(key, c_out, c_in, k):
    """weight_norm(Conv1d) after .weight.data.normal_(0, 0.01).
    The hook computes w = g * v/||v|| with g initialized to ||v||, i.e. w == v,
    so use v directly (identical value, no NaN risk for zero-norm filters)."""
    kv, kb = jax.random.split(key)
    w = 0.01 * jax.random.normal(kv, (c_out, c_in, k), jnp.float32)
    bound = 1.0 / jnp.sqrt(c_in * k)
    b = jax.random.uniform(kb, (c_out,), jnp.float32, -bound, bound)
    return w, b


def _plain_conv_params(key, c_out, c_in, k):
    kv, kb = jax.random.split(key)
    w = 0.01 * jax.random.normal(kv, (c_out, c_in, k), jnp.float32)
    bound = 1.0 / jnp.sqrt(c_in * k)
    b = jax.random.uniform(kb, (c_out,), jnp.float32, -bound, bound)
    return w, b


def build_params(key, num_inputs, num_channels, kernel_size):
    """Raw PyTorch-layout parameters: w (Cout, Cin, K) f32, b (Cout,) f32."""
    params = []
    for i, c_out in enumerate(num_channels):
        c_in = num_inputs if i == 0 else num_channels[i - 1]
        key, k1, k2, k3 = jax.random.split(key, 4)
        w1, b1 = _weight_norm_params(k1, c_out, c_in, kernel_size)
        w2, b2 = _weight_norm_params(k2, c_out, c_out, kernel_size)
        if c_in != c_out:
            wd, bd = _plain_conv_params(k3, c_out, c_in, 1)
        else:
            wd, bd = None, None
        params.append(dict(w1=w1, b1=b1, w2=w2, b2=b2, wd=wd, bd=bd))
    return params


def prepare_kernel_params(raw_params):
    """Hoisted one-time prep: (Cout,Cin,1) -> (Cin_pad,Cout_pad) bf16, biases
    padded f32; when a downsample exists, concatenate it column-wise onto w1/b1
    so the kernel does one wider MXU pass over x and splits the result."""
    blocks = []
    for p in raw_params:
        c_out, c_in, k = p["w1"].shape
        assert k == 1, "fused kernel targets kernel_size == 1 (see TODO at top)"
        ci_p, co_p = _round_up(c_in, LANE), _round_up(c_out, LANE)

        def prep_w(w, ci, co):
            w2d = jnp.transpose(w[:, :, 0])                      # (Cin, Cout)
            w2d = jnp.pad(w2d, ((0, ci - w2d.shape[0]), (0, co - w2d.shape[1])))
            return w2d.astype(jnp.bfloat16)

        def prep_b(b, co):
            return jnp.pad(b, (0, co - b.shape[0])).reshape(1, co).astype(jnp.float32)

        w1, b1 = prep_w(p["w1"], ci_p, co_p), prep_b(p["b1"], co_p)
        w2, b2 = prep_w(p["w2"], co_p, co_p), prep_b(p["b2"], co_p)
        has_ds = p["wd"] is not None
        if has_ds:
            w1 = jnp.concatenate([w1, prep_w(p["wd"], ci_p, co_p)], axis=1)
            b1 = jnp.concatenate([b1, prep_b(p["bd"], co_p)], axis=1)

        blocks.append(dict(
            w1=w1, b1=b1, w2=w2, b2=b2, has_ds=has_ds,
            c_in=c_in, c_out=c_out, c_in_pad=ci_p, c_out_pad=co_p,
        ))
    return blocks


# ----------------------------------------------------------------------------
# Forward pass (SimpleConvNet) and pure-JAX reference
# ----------------------------------------------------------------------------
def simple_convnet_forward(x_ncl, blocks):
    """x_ncl: PyTorch-style (N, C, L) f32 -> (N, C_last, L) f32."""
    n, c, l = x_ncl.shape
    rows = n * l
    c0_pad = blocks[0]["c_in_pad"]
    c_last = blocks[-1]["c_out"]
    # NCL -> flattened (N*L, C) rows, bf16, channel lane-padded (layout prep only).
    x = jnp.transpose(x_ncl, (0, 2, 1)).reshape(rows, c).astype(jnp.bfloat16)
    x = jnp.pad(x, ((0, 0), (0, c0_pad - c)))
    y = fused_simple_convnet(x, blocks, rows)
    y = y[:rows, :c_last].astype(jnp.float32).reshape(n, l, c_last)
    return jnp.transpose(y, (0, 2, 1))                           # rows -> NCL


def simple_convnet_ref(x_ncl, raw_params):
    """Pure-JAX reference using the same bf16-in / f32-accumulate arithmetic."""
    x = jnp.transpose(x_ncl, (0, 2, 1)).astype(jnp.bfloat16)
    for p in raw_params:
        w1 = jnp.transpose(p["w1"][:, :, 0]).astype(jnp.bfloat16)
        w2 = jnp.transpose(p["w2"][:, :, 0]).astype(jnp.bfloat16)
        h1 = jnp.maximum(
            jnp.matmul(x, w1, preferred_element_type=jnp.float32) + p["b1"], 0.0)
        h2 = jnp.maximum(
            jnp.matmul(h1.astype(jnp.bfloat16), w2,
                       preferred_element_type=jnp.float32) + p["b2"], 0.0)
        if p["wd"] is None:
            res = x.astype(jnp.float32)
        else:
            wd = jnp.transpose(p["wd"][:, :, 0]).astype(jnp.bfloat16)
            res = jnp.matmul(x, wd, preferred_element_type=jnp.float32) + p["bd"]
        x = jnp.maximum(h2 + res, 0.0).astype(jnp.bfloat16)      # mirror bf16 hand-off
    return jnp.transpose(x.astype(jnp.float32), (0, 2, 1))


# ----------------------------------------------------------------------------
if __name__ == "__main__":
    key = jax.random.PRNGKey(0)
    k_in, k_par = jax.random.split(key)

    # Small config consistent with SimpleConvNet(num_inputs, num_channels, kernel_size).
    num_inputs = 4
    num_channels = [8, 8, 16]   # middle block exercises the identity-residual path
    kernel_size = 1             # TODO(synk): k>=2 is shape-invalid in the reference (no Chomp1d)
    N, L = 2, 16

    x = jax.random.normal(k_in, (N, num_inputs, L), jnp.float32)      # PyTorch NCL input
    raw_params = build_params(k_par, num_inputs, num_channels, kernel_size)
    kernel_params = prepare_kernel_params(raw_params)                 # hoisted prep (once)

    @jax.jit
    def fwd(inp):
        return simple_convnet_forward(inp, kernel_params)

    y = jax.block_until_ready(fwd(x))
    y_ref = simple_convnet_ref(x, raw_params)

    assert y.shape == (N, num_channels[-1], L), y.shape
    assert jnp.allclose(y, y_ref, atol=1e-3, rtol=1e-2), float(jnp.max(jnp.abs(y - y_ref)))

    print("KERNEL_OK")
</pallas_src>

<mosaic_0001>
module attributes {stable_mosaic.version = 11 : i64} {
  func.func @_fused_tcn_kernel(%arg0: i32, %arg1: memref<16x128xbf16, #tpu.memory_space<vmem>>, %arg2: memref<128x256xbf16, #tpu.memory_space<vmem>>, %arg3: memref<1x256xf32, #tpu.memory_space<vmem>>, %arg4: memref<128x128xbf16, #tpu.memory_space<vmem>>, %arg5: memref<1x128xf32, #tpu.memory_space<vmem>>, %arg6: memref<128x128xbf16, #tpu.memory_space<vmem>>, %arg7: memref<1x128xf32, #tpu.memory_space<vmem>>, %arg8: memref<128x128xbf16, #tpu.memory_space<vmem>>, %arg9: memref<1x128xf32, #tpu.memory_space<vmem>>, %arg10: memref<128x256xbf16, #tpu.memory_space<vmem>>, %arg11: memref<1x256xf32, #tpu.memory_space<vmem>>, %arg12: memref<128x128xbf16, #tpu.memory_space<vmem>>, %arg13: memref<1x128xf32, #tpu.memory_space<vmem>>, %arg14: memref<16x128xbf16, #tpu.memory_space<vmem>>) attributes {dimension_semantics = [#tpu.dimension_semantics<parallel>], iteration_bounds = array<i64: 2>, scalar_prefetch = 0 : i64, scratch_operands = 0 : i64, tpu.core_type = #tpu.core_type<tc>, window_params = [{transform_indices = @transform_0, window_bounds = array<i64: 16, 128>}, {pipeline_mode = #tpu.pipeline_mode<synchronous>, transform_indices = @transform_1, window_bounds = array<i64: 128, 256>}, {pipeline_mode = #tpu.pipeline_mode<synchronous>, transform_indices = @transform_2, window_bounds = array<i64: 1, 256>}, {pipeline_mode = #tpu.pipeline_mode<synchronous>, transform_indices = @transform_3, window_bounds = array<i64: 128, 128>}, {pipeline_mode = #tpu.pipeline_mode<synchronous>, transform_indices = @transform_4, window_bounds = array<i64: 1, 128>}, {pipeline_mode = #tpu.pipeline_mode<synchronous>, transform_indices = @transform_5, window_bounds = array<i64: 128, 128>}, {pipeline_mode = #tpu.pipeline_mode<synchronous>, transform_indices = @transform_6, window_bounds = array<i64: 1, 128>}, {pipeline_mode = #tpu.pipeline_mode<synchronous>, transform_indices = @transform_7, window_bounds = array<i64: 128, 128>}, {pipeline_mode = #tpu.pipeline_mode<synchronous>, transform_indices = @transform_8, window_bounds = array<i64: 1, 128>}, {pipeline_mode = #tpu.pipeline_mode<synchronous>, transform_indices = @transform_9, window_bounds = array<i64: 128, 256>}, {pipeline_mode = #tpu.pipeline_mode<synchronous>, transform_indices = @transform_10, window_bounds = array<i64: 1, 256>}, {pipeline_mode = #tpu.pipeline_mode<synchronous>, transform_indices = @transform_11, window_bounds = array<i64: 128, 128>}, {pipeline_mode = #tpu.pipeline_mode<synchronous>, transform_indices = @transform_12, window_bounds = array<i64: 1, 128>}, {transform_indices = @transform_13, window_bounds = array<i64: 16, 128>}]} {
    %c0 = arith.constant 0 : index
    %c0_0 = arith.constant 0 : index
    %0 = vector.load %arg1[%c0, %c0_0] : memref<16x128xbf16, #tpu.memory_space<vmem>>, vector<16x128xbf16>
    %c0_1 = arith.constant 0 : index
    %c0_2 = arith.constant 0 : index
    %1 = vector.load %arg2[%c0_1, %c0_2] : memref<128x256xbf16, #tpu.memory_space<vmem>>, vector<128x256xbf16>
    %cst = arith.constant dense<0.000000e+00> : vector<16x256xf32>
    %2 = tpu.matmul %0, %1, %cst {dimension_numbers = #tpu.dot_dimension_numbers<[1], [0], [0], [1], [0, 0, 1, 1], [], []>} : vector<16x128xbf16>, vector<128x256xbf16>, vector<16x256xf32> -> vector<16x256xf32>
    %c0_3 = arith.constant 0 : index
    %c0_4 = arith.constant 0 : index
    %3 = vector.load %arg3[%c0_3, %c0_4] : memref<1x256xf32, #tpu.memory_space<vmem>>, vector<1x256xf32>
    %4 = vector.broadcast %3 : vector<1x256xf32> to vector<16x256xf32>
    %5 = arith.addf %2, %4 : vector<16x256xf32>
    %6 = vector.extract_strided_slice %5 {offsets = [0, 0], sizes = [16, 128], strides = [1, 1]} : vector<16x256xf32> to vector<16x128xf32>
    %cst_5 = arith.constant 0.000000e+00 : f32
    %7 = vector.broadcast %cst_5 : f32 to vector<16x128xf32>
    %8 = arith.maximumf %6, %7 : vector<16x128xf32>
    %9 = vector.extract_strided_slice %5 {offsets = [0, 128], sizes = [16, 128], strides = [1, 1]} : vector<16x256xf32> to vector<16x128xf32>
    %10 = arith.truncf %8 : vector<16x128xf32> to vector<16x128xbf16>
    %c0_6 = arith.constant 0 : index
    %c0_7 = arith.constant 0 : index
    %11 = vector.load %arg4[%c0_6, %c0_7] : memref<128x128xbf16, #tpu.memory_space<vmem>>, vector<128x128xbf16>
    %cst_8 = arith.constant dense<0.000000e+00> : vector<16x128xf32>
    %12 = tpu.matmul %10, %11, %cst_8 {dimension_numbers = #tpu.dot_dimension_numbers<[1], [0], [0], [1], [0, 0, 1, 1], [], []>} : vector<16x128xbf16>, vector<128x128xbf16>, vector<16x128xf32> -> vector<16x128xf32>
    %c0_9 = arith.constant 0 : index
    %c0_10 = arith.constant 0 : index
    %13 = vector.load %arg5[%c0_9, %c0_10] : memref<1x128xf32, #tpu.memory_space<vmem>>, vector<1x128xf32>
    %14 = vector.broadcast %13 : vector<1x128xf32> to vector<16x128xf32>
    %15 = arith.addf %12, %14 : vector<16x128xf32>
    %cst_11 = arith.constant 0.000000e+00 : f32
    %16 = vector.broadcast %cst_11 : f32 to vector<16x128xf32>
    %17 = arith.maximumf %15, %16 : vector<16x128xf32>
    %18 = arith.addf %17, %9 : vector<16x128xf32>
    %cst_12 = arith.constant 0.000000e+00 : f32
    %19 = vector.broadcast %cst_12 : f32 to vector<16x128xf32>
    %20 = arith.maximumf %18, %19 : vector<16x128xf32>
    %21 = arith.truncf %20 : vector<16x128xf32> to vector<16x128xbf16>
    %c0_13 = arith.constant 0 : index
    %c0_14 = arith.constant 0 : index
    %22 = vector.load %arg6[%c0_13, %c0_14] : memref<128x128xbf16, #tpu.memory_space<vmem>>, vector<128x128xbf16>
    %cst_15 = arith.constant dense<0.000000e+00> : vector<16x128xf32>
    %23 = tpu.matmul %21, %22, %cst_15 {dimension_numbers = #tpu.dot_dimension_numbers<[1], [0], [0], [1], [0, 0, 1, 1], [], []>} : vector<16x128xbf16>, vector<128x128xbf16>, vector<16x128xf32> -> vector<16x128xf32>
    %c0_16 = arith.constant 0 : index
    %c0_17 = arith.constant 0 : index
    %24 = vector.load %arg7[%c0_16, %c0_17] : memref<1x128xf32, #tpu.memory_space<vmem>>, vector<1x128xf32>
    %25 = vector.broadcast %24 : vector<1x128xf32> to vector<16x128xf32>
    %26 = arith.addf %23, %25 : vector<16x128xf32>
    %cst_18 = arith.constant 0.000000e+00 : f32
    %27 = vector.broadcast %cst_18 : f32 to vector<16x128xf32>
    %28 = arith.maximumf %26, %27 : vector<16x128xf32>
    %29 = arith.extf %21 : vector<16x128xbf16> to vector<16x128xf32>
    %30 = arith.truncf %28 : vector<16x128xf32> to vector<16x128xbf16>
    %c0_19 = arith.constant 0 : index
    %c0_20 = arith.constant 0 : index
    %31 = vector.load %arg8[%c0_19, %c0_20] : memref<128x128xbf16, #tpu.memory_space<vmem>>, vector<128x128xbf16>
    %cst_21 = arith.constant dense<0.000000e+00> : vector<16x128xf32>
    %32 = tpu.matmul %30, %31, %cst_21 {dimension_numbers = #tpu.dot_dimension_numbers<[1], [0], [0], [1], [0, 0, 1, 1], [], []>} : vector<16x128xbf16>, vector<128x128xbf16>, vector<16x128xf32> -> vector<16x128xf32>
    %c0_22 = arith.constant 0 : index
    %c0_23 = arith.constant 0 : index
    %33 = vector.load %arg9[%c0_22, %c0_23] : memref<1x128xf32, #tpu.memory_space<vmem>>, vector<1x128xf32>
    %34 = vector.broadcast %33 : vector<1x128xf32> to vector<16x128xf32>
    %35 = arith.addf %32, %34 : vector<16x128xf32>
    %cst_24 = arith.constant 0.000000e+00 : f32
    %36 = vector.broadcast %cst_24 : f32 to vector<16x128xf32>
    %37 = arith.maximumf %35, %36 : vector<16x128xf32>
    %38 = arith.addf %37, %29 : vector<16x128xf32>
    %cst_25 = arith.constant 0.000000e+00 : f32
    %39 = vector.broadcast %cst_25 : f32 to vector<16x128xf32>
    %40 = arith.maximumf %38, %39 : vector<16x128xf32>
    %41 = arith.truncf %40 : vector<16x128xf32> to vector<16x128xbf16>
    %c0_26 = arith.constant 0 : index
    %c0_27 = arith.constant 0 : index
    %42 = vector.load %arg10[%c0_26, %c0_27] : memref<128x256xbf16, #tpu.memory_space<vmem>>, vector<128x256xbf16>
    %cst_28 = arith.constant dense<0.000000e+00> : vector<16x256xf32>
    %43 = tpu.matmul %41, %42, %cst_28 {dimension_numbers = #tpu.dot_dimension_numbers<[1], [0], [0], [1], [0, 0, 1, 1], [], []>} : vector<16x128xbf16>, vector<128x256xbf16>, vector<16x256xf32> -> vector<16x256xf32>
    %c0_29 = arith.constant 0 : index
    %c0_30 = arith.constant 0 : index
    %44 = vector.load %arg11[%c0_29, %c0_30] : memref<1x256xf32, #tpu.memory_space<vmem>>, vector<1x256xf32>
    %45 = vector.broadcast %44 : vector<1x256xf32> to vector<16x256xf32>
    %46 = arith.addf %43, %45 : vector<16x256xf32>
    %47 = vector.extract_strided_slice %46 {offsets = [0, 0], sizes = [16, 128], strides = [1, 1]} : vector<16x256xf32> to vector<16x128xf32>
    %cst_31 = arith.constant 0.000000e+00 : f32
    %48 = vector.broadcast %cst_31 : f32 to vector<16x128xf32>
    %49 = arith.maximumf %47, %48 : vector<16x128xf32>
    %50 = vector.extract_strided_slice %46 {offsets = [0, 128], sizes = [16, 128], strides = [1, 1]} : vector<16x256xf32> to vector<16x128xf32>
    %51 = arith.truncf %49 : vector<16x128xf32> to vector<16x128xbf16>
    %c0_32 = arith.constant 0 : index
    %c0_33 = arith.constant 0 : index
    %52 = vector.load %arg12[%c0_32, %c0_33] : memref<128x128xbf16, #tpu.memory_space<vmem>>, vector<128x128xbf16>
    %cst_34 = arith.constant dense<0.000000e+00> : vector<16x128xf32>
    %53 = tpu.matmul %51, %52, %cst_34 {dimension_numbers = #tpu.dot_dimension_numbers<[1], [0], [0], [1], [0, 0, 1, 1], [], []>} : vector<16x128xbf16>, vector<128x128xbf16>, vector<16x128xf32> -> vector<16x128xf32>
    %c0_35 = arith.constant 0 : index
    %c0_36 = arith.constant 0 : index
    %54 = vector.load %arg13[%c0_35, %c0_36] : memref<1x128xf32, #tpu.memory_space<vmem>>, vector<1x128xf32>
    %55 = vector.broadcast %54 : vector<1x128xf32> to vector<16x128xf32>
    %56 = arith.addf %53, %55 : vector<16x128xf32>
    %cst_37 = arith.constant 0.000000e+00 : f32
    %57 = vector.broadcast %cst_37 : f32 to vector<16x128xf32>
    %58 = arith.maximumf %56, %57 : vector<16x128xf32>
    %59 = arith.addf %58, %50 : vector<16x128xf32>
    %cst_38 = arith.constant 0.000000e+00 : f32
    %60 = vector.broadcast %cst_38 : f32 to vector<16x128xf32>
    %61 = arith.maximumf %59, %60 : vector<16x128xf32>
    %62 = arith.truncf %61 : vector<16x128xf32> to vector<16x128xbf16>
    %c0_39 = arith.constant 0 : index
    %c0_40 = arith.constant 0 : index
    %63 = vector.load %arg14[%c0_39, %c0_40] : memref<16x128xbf16, #tpu.memory_space<vmem>>, vector<16x128xbf16>
    tpu.vector_store %arg14[%c0_39, %c0_40], %62 {strides = array<i32>} : memref<16x128xbf16, #tpu.memory_space<vmem>>, vector<16x128xbf16>,
    return
  }
  func.func @transform_0(%arg0: i32) -> (i32, i32) {
    %c0_i32 = arith.constant 0 : i32
    %c0_i32_0 = arith.constant 0 : i32
    return %arg0, %c0_i32 : i32, i32
  }
  func.func @transform_1(%arg0: i32) -> (i32, i32) {
    %c0_i32 = arith.constant 0 : i32
    %c0_i32_0 = arith.constant 0 : i32
    %c0_i32_1 = arith.constant 0 : i32
    return %c0_i32, %c0_i32_0 : i32, i32
  }
  func.func @transform_2(%arg0: i32) -> (i32, i32) {
    %c0_i32 = arith.constant 0 : i32
    %c0_i32_0 = arith.constant 0 : i32
    %c0_i32_1 = arith.constant 0 : i32
    return %c0_i32, %c0_i32_0 : i32, i32
  }
  func.func @transform_3(%arg0: i32) -> (i32, i32) {
    %c0_i32 = arith.constant 0 : i32
    %c0_i32_0 = arith.constant 0 : i32
    %c0_i32_1 = arith.constant 0 : i32
    return %c0_i32, %c0_i32_0 : i32, i32
  }
  func.func @transform_4(%arg0: i32) -> (i32, i32) {
    %c0_i32 = arith.constant 0 : i32
    %c0_i32_0 = arith.constant 0 : i32
    %c0_i32_1 = arith.constant 0 : i32
    return %c0_i32, %c0_i32_0 : i32, i32
  }
  func.func @transform_5(%arg0: i32) -> (i32, i32) {
    %c0_i32 = arith.constant 0 : i32
    %c0_i32_0 = arith.constant 0 : i32
    %c0_i32_1 = arith.constant 0 : i32
    return %c0_i32, %c0_i32_0 : i32, i32
  }
  func.func @transform_6(%arg0: i32) -> (i32, i32) {
    %c0_i32 = arith.constant 0 : i32
    %c0_i32_0 = arith.constant 0 : i32
    %c0_i32_1 = arith.constant 0 : i32
    return %c0_i32, %c0_i32_0 : i32, i32
  }
  func.func @transform_7(%arg0: i32) -> (i32, i32) {
    %c0_i32 = arith.constant 0 : i32
    %c0_i32_0 = arith.constant 0 : i32
    %c0_i32_1 = arith.constant 0 : i32
    return %c0_i32, %c0_i32_0 : i32, i32
  }
  func.func @transform_8(%arg0: i32) -> (i32, i32) {
    %c0_i32 = arith.constant 0 : i32
    %c0_i32_0 = arith.constant 0 : i32
    %c0_i32_1 = arith.constant 0 : i32
    return %c0_i32, %c0_i32_0 : i32, i32
  }
  func.func @transform_9(%arg0: i32) -> (i32, i32) {
    %c0_i32 = arith.constant 0 : i32
    %c0_i32_0 = arith.constant 0 : i32
    %c0_i32_1 = arith.constant 0 : i32
    return %c0_i32, %c0_i32_0 : i32, i32
  }
  func.func @transform_10(%arg0: i32) -> (i32, i32) {
    %c0_i32 = arith.constant 0 : i32
    %c0_i32_0 = arith.constant 0 : i32
    %c0_i32_1 = arith.constant 0 : i32
    return %c0_i32, %c0_i32_0 : i32, i32
  }
  func.func @transform_11(%arg0: i32) -> (i32, i32) {
    %c0_i32 = arith.constant 0 : i32
    %c0_i32_0 = arith.constant 0 : i32
    %c0_i32_1 = arith.constant 0 : i32
    return %c0_i32, %c0_i32_0 : i32, i32
  }
  func.func @transform_12(%arg0: i32) -> (i32, i32) {
    %c0_i32 = arith.constant 0 : i32
    %c0_i32_0 = arith.constant 0 : i32
    %c0_i32_1 = arith.constant 0 : i32
    return %c0_i32, %c0_i32_0 : i32, i32
  }
  func.func @transform_13(%arg0: i32) -> (i32, i32) {
    %c0_i32 = arith.constant 0 : i32
    %c0_i32_0 = arith.constant 0 : i32
    return %arg0, %c0_i32 : i32, i32
  }
}

</mosaic_0001>

<bundles_post_ra>
// kernel: fwd.1
= control target key start
LH: loop header
LB: loop body
LE: loop exit
PB: predicated region body
PF: predicated region fallthrough
CT: control target
= control target key end

     0   :  { %s2071_s0 = inlined_call_operand.vmem [shape: bf16[32,128], index: 0, kind: input, shape index: {}]   ;;  %s2072_s1 = inlined_call_operand.hbm [shape: bf16[128,256], index: 1, kind: input, shape index: {}]   ;;  %s2073_s2 = inlined_call_operand.vmem [shape: f32[1,256], index: 2, kind: input, shape index: {}]   ;;  %s2074_s3 = inlined_call_operand.hbm [shape: bf16[128,128], index: 3, kind: input, shape index: {}]   ;;  %s2075_s4 = inlined_call_operand.vmem [shape: f32[1,128], index: 4, kind: input, shape index: {}]   ;;  %s2076_s5 = inlined_call_operand.hbm [shape: bf16[128,128], index: 5, kind: input, shape index: {}]   ;;  %s2077_s6 = inlined_call_operand.vmem [shape: f32[1,128], index: 6, kind: input, shape index: {}]   ;;  %s2078_s7 = inlined_call_operand.hbm [shape: bf16[128,128], index: 7, kind: input, shape index: {}]   ;;  %s2079_s8 = inlined_call_operand.vmem [shape: f32[1,128], index: 8, kind: input, shape index: {}]   ;;  %s2080_s9 = inlined_call_operand.hbm [shape: bf16[128,256], index: 9, kind: input, shape index: {}]   ;;  %s2081_s10 = inlined_call_operand.vmem [shape: f32[1,256], index: 10, kind: input, shape index: {}]   ;;  %s2082_s11 = inlined_call_operand.vmem [shape: bf16[128,128], index: 11, kind: input, shape index: {}]   ;;  %s2083_s12 = inlined_call_operand.vmem [shape: f32[1,128], index: 12, kind: input, shape index: {}]   ;;  %s2084_s13 = inlined_call_operand.vmem [shape: bf16[32,128], index: 13, kind: output, shape index: {}]  }
   0x1   :  { %2086 = sst [smem:[#allocation13_spill]] %s2072_s1 }
   0x2   :  { %2087 = sst [smem:[#allocation14_spill]] %s2074_s3 }
   0x3   :  { %2088 = sst [smem:[#allocation15_spill]] %s2078_s7 }
   0x4   :  { %18 = vsyncpa [#allocation3], 0 }
   0x5   :  { %19 = vsyncpa [#allocation5], 0 }
   0x6   :  { %20 = vsyncpa [#allocation8], 0  ;;  %s1938_s25 = smov 0  }
   0x7 LB: > { %s2089_s3 = sld [smem:[#allocation14_spill]]  ;;  %s2085_s29 = sadd.s32 4294967295, %s1857_s25   ;;  %s1857_s25 = sphi %s1938_s25, %s26_s25  }
   0x8   : > { %p1273_p0 = scmp.ge.s32.totalorder %s1857_s25, 1  ;;  %p335_p1 = scmp.lt.s32.totalorder %s1857_s25, 3 }
   0x9   : > { %p1951_p2 = scmp.eq.s32.totalorder %s2085_s29, 0  ;;  %s1859_s15 = smov [#allocation4]  }
   0xa   : > { %p1955_p3 = pnand %p1273_p0, %p335_p1  ;;  %s365_s16 = sshll.u32 %s1859_s15, 4  ;;  %s366_s16 = int_to_ptr.vmem [resolvable:$true] %s365_s16 }
   0xb   : > { %s2092_s7 = sld [smem:[#allocation15_spill]]  ;;  %s1860_s21 = smov [#allocation7]  }
   0xc   : > { %p1642_p4 = pneg %p1955_p3  ;;  %s399_s22 = sshll.u32 %s1860_s21, 4  ;;  %s400_s22 = int_to_ptr.vmem [resolvable:$true] %s399_s22 }
   0xd   : > { %s363_s28 = sshll.u32 %s2089_s3, 4  ;;  %s2094_s1 = sld [smem:[#allocation13_spill]]  ;;  %s364_s28 = int_to_ptr.hbm [resolvable:$true] %s363_s28 }
   0xe   : > { %p1966_p5 = pnand %p1951_p2, %p1642_p4  ;;  %s1861_s27 = smov 64  }
   0xf   : > { %s1862_s15 = smov 4   ;;  %s1863_s17 = smov [#allocation2]  }
  0x10   : > { %1648 = dma.hbm_to_vmem [thread:$0]  (!%p1966_p5), %s364_s28, 1024, %s366_s16, [#allocation5], %s1861_s27, %s1861_s27, %s1862_s15  }
  0x11   : > { %s397_s19 = sshll.u32 %s2092_s7, 4  ;;  %s348_s18 = sshll.u32 %s1863_s17, 4  ;;  %s398_s19 = int_to_ptr.hbm [resolvable:$true] %s397_s19  ;;  %s349_s18 = int_to_ptr.vmem [resolvable:$true] %s348_s18 }
  0x12   : > { %1654 = dma.hbm_to_vmem [thread:$0]  (!%p1966_p5), %s398_s19, 1024, %s400_s22, [#allocation8], %s1861_s27, %s1861_s27, %s1862_s15  }
  0x13   : > { %s346_s26 = sshll.u32 %s2094_s1, 4  ;;  %s1864_s29 = smov 128   ;;  %s347_s26 = int_to_ptr.hbm [resolvable:$true] %s346_s26 }
  0x14   : > { %s1865_s3 = smov 8   ;;  %s380_s24 = sshll.u32 %s2076_s5, 4  ;;  %s381_s24 = int_to_ptr.hbm [resolvable:$true] %s380_s24 }
  0x15   : > { %1645 = dma.hbm_to_vmem [thread:$0]  (!%p1966_p5), %s347_s26, 2048, %s349_s18, [#allocation3], %s1864_s29, %s1864_s29, %s1865_s3  }
  0x16   : > { %s1866_s1 = smov [#allocation6]   ;;  %s414_s19 = sshll.u32 %s2080_s9, 4  ;;  %s415_s19 = int_to_ptr.hbm [resolvable:$true] %s414_s19 }
  0x17   : > { %s382_s7 = sshll.u32 %s1866_s1, 4  ;;  %s1867_s22 = smov [#allocation9]   ;;  %s383_s7 = int_to_ptr.vmem [resolvable:$true] %s382_s7 }
  0x18   : > { %1651 = dma.hbm_to_vmem [thread:$0]  (!%p1966_p5), %s381_s24, 1024, %s383_s7, [#allocation5], %s1861_s27, %s1861_s27, %s1862_s15  }
  0x19   : > { %s416_s17 = sshll.u32 %s1867_s22, 4  ;;  %450 = sbr.rel (%p1955_p3) target bundleno = 944 (0x3b0), region = 72  ;;  %s417_s17 = int_to_ptr.vmem [resolvable:$true] %s416_s17 }
  0x1a   : > { %1657 = dma.hbm_to_vmem [thread:$0]  (!%p1966_p5), %s415_s19, 2048, %s417_s17, [#allocation8], %s1864_s29, %s1864_s29, %s1865_s3  }
  0x1e   : > { %1844 = dma.done.wait (%p1951_p2), [#allocation3], 2048  }
  0x1f   : > { %1846 = vsyncadd (%p1951_p2), [#allocation3], 4294965248 }
  0x20   : > { %1848 = dma.done.wait (%p1951_p2), [#allocation5], 2048  }
  0x21   : > { %1850 = vsyncadd (%p1951_p2), [#allocation5], 4294965248 }
  0x22   : > { %1852 = dma.done.wait (%p1951_p2), [#allocation8], 3072  }
  0x23   : > { %1854 = vsyncadd (%p1951_p2), [#allocation8], 4294964224  ;;  %v1352_v0 = vld [vmem:[#allocation2 + $0x70] sm:$0xf]  ;;  %v1568_v1 = vld [vmem:[#allocation2 + $0x74] sm:$0xf0] }
  0x24   : > { %v1344_v2 = vld [vmem:[#allocation2 + $0x60] sm:$0xf]  ;;  %v1353_v3 = vor.u32 %v1568_v1, %v1352_v0  ;;  %v1566_v4 = vld [vmem:[#allocation2 + $0x64] sm:$0xf0]  ;;  %v1336_v6 = vld [vmem:[#allocation2 + $0x50] sm:$0xf] }
  0x25   : > { %v1345_v5 = vor.u32 %v1566_v4, %v1344_v2  ;;  %v1564_v7 = vld [vmem:[#allocation2 + $0x54] sm:$0xf0]  ;;  %v1567_v8 = vld [vmem:[#allocation2 + $0x74] sm:$0xf]  ;;  %v1354_v9 = vld [vmem:[#allocation2 + $0x78] sm:$0xf0] }
  0x26   : > { %637 = vmatpush.bf16.msra.mxu0 %v1353_v3  ;;  %v1576_v10 = vld [vmem:[#allocation4 + $0x38] sm:$0xff]  ;;  %v1565_v11 = vld [vmem:[#allocation2 + $0x64] sm:$0xf]  ;;  %v1337_v12 = vor.u32 %v1564_v7, %v1336_v6  ;;  %v1357_v13 = vor.u32 %v1567_v8, %v1354_v9  ;;  %v1346_v14 = vld [vmem:[#allocation2 + $0x68] sm:$0xf0]  ;;  %s2095_s1 = sadd.s32 4294967295, %s1857_s25  }
  0x27   : > { %v1328_v15 = vld [vmem:[#allocation2 + $0x40] sm:$0xf]  ;;  %v1562_v16 = vld [vmem:[#allocation2 + $0x44] sm:$0xf0]  ;;  %736 = vmatpush.bf16.msra.mxu2 %v1576_v10  ;;  %v1575_v17 = vld [vmem:[#allocation4 + $0x30] sm:$0xff]  ;;  %v1349_v18 = vor.u32 %v1565_v11, %v1346_v14  ;;  %s1286_s3 = sshll.u32 %s2095_s1, 1 }
  0x28   : > { %651 = vmatpush.bf16.msra.mxu1 %v1357_v13  ;;  %v1563_v19 = vld [vmem:[#allocation2 + $0x54] sm:$0xf]  ;;  %v1338_v20 = vld [vmem:[#allocation2 + $0x58] sm:$0xf0]  ;;  %v1329_v21 = vor.u32 %v1562_v16, %v1328_v15  ;;  %v1320_v22 = vld [vmem:[#allocation2 + $0x30] sm:$0xf] }
  0x29   : > { %v1560_v23 = vld [vmem:[#allocation2 + $0x34] sm:$0xf0]  ;;  %v1574_v24 = vld [vmem:[#allocation4 + $0x28] sm:$0xff]  ;;  %v1341_v25 = vor.u32 %v1563_v19, %v1338_v20  ;;  %v1561_v26 = vld [vmem:[#allocation2 + $0x44] sm:$0xf]  ;;  %p516_p6 = scmp.lt.s32.totalorder %s1286_s3, 3 }
  0x2a   : > { %638 = vmatpush.bf16.msra.mxu0 %v1345_v5  ;;  %v1330_v27 = vld [vmem:[#allocation2 + $0x48] sm:$0xf0]  ;;  %v1321_v28 = vor.u32 %v1560_v23, %v1320_v22  ;;  %v1312_v29 = vld [vmem:[#allocation2 + $0x20] sm:$0xf]  ;;  %v1558_v30 = vld [vmem:[#allocation2 + $0x24] sm:$0xf0] }
  0x2b   : > { %737 = vmatpush.bf16.msra.mxu2 %v1575_v17  ;;  %v1573_v31 = vld [vmem:[#allocation4 + $0x20] sm:$0xff]  ;;  %v1333_v32 = vor.u32 %v1561_v26, %v1330_v27  ;;  %v1313_v33 = vor.u32 %v1558_v30, %v1312_v29  ;;  %v1304_v34 = vld [vmem:[#allocation2 + $0x10] sm:$0xf]  ;;  %v1556_v35 = vld [vmem:[#allocation2 + $0x14] sm:$0xf0]  ;;  %s2097_s3 = smov (!%p516_p6, %s1286_s3), 3 }
  0x2c   : > { %652 = vmatpush.bf16.msra.mxu1 %v1349_v18  ;;  %v1305_v36 = vor.u32 %v1556_v35, %v1304_v34  ;;  %v1296_v37 = vld [vmem:[#allocation2] sm:$0xf]  ;;  %v1554_v38 = vld [vmem:[#allocation2 + $0x4] sm:$0xf0]  ;;  %s1287_s7 = sshll.u32 %s2097_s3, 2  ;;  %v1572_v44 = vld [vmem:[#allocation4 + $0x18] sm:$0xff] }
  0x2d   : > { %v1297_v39 = vor.u32 %v1554_v38, %v1296_v37  ;;  %s519_s14 = scalar_lea.vmem %s2071_s0, %s1287_s7  ;;  %v1559_v41 = vld [vmem:[#allocation2 + $0x34] sm:$0xf]  ;;  %v1322_v42 = vld [vmem:[#allocation2 + $0x38] sm:$0xf0]  ;;  %v1557_v45 = vld [vmem:[#allocation2 + $0x24] sm:$0xf]  ;;  %s525_s1 = scalar_lea.vmem %s2084_s13, %s1287_s7 }
  0x2e   : > { %639 = vmatpush.bf16.msra.mxu0 %v1337_v12  ;;  %v1552_v40 = vld [vmem:[%s519_s14] sm:$0xff]  ;;  %v1325_v43 = vor.u32 %v1559_v41, %v1322_v42  ;;  %v1314_v46 = vld [vmem:[#allocation2 + $0x28] sm:$0xf0]  ;;  %v1571_v48 = vld [vmem:[#allocation4 + $0x10] sm:$0xff] }
  0x2f   : > { %738 = vmatpush.bf16.msra.mxu2 %v1574_v24  ;;  %v1317_v47 = vor.u32 %v1557_v45, %v1314_v46  ;;  %v1555_v49 = vld [vmem:[#allocation2 + $0x14] sm:$0xf]  ;;  %v1306_v50 = vld [vmem:[#allocation2 + $0x18] sm:$0xf0]  ;;  %v1570_v52 = vld [vmem:[#allocation4 + $0x8] sm:$0xff] }
  0x30   : > { %653 = vmatpush.bf16.msra.mxu1 %v1341_v25  ;;  %v1309_v51 = vor.u32 %v1555_v49, %v1306_v50  ;;  %v1553_v53 = vld [vmem:[#allocation2 + $0x4] sm:$0xf]  ;;  %v1298_v54 = vld [vmem:[#allocation2 + $0x8] sm:$0xf0]  ;;  %v1584_v57 = vld [vmem:[#allocation6 + $0x38] sm:$0xff] }
  0x31   : > { %v1301_v55 = vor.u32 %v1553_v53, %v1298_v54  ;;  %v1569_v56 = vld [vmem:[#allocation4] sm:$0xff]  ;;  %832 = vmatpush.bf16.msra.mxu3 %v1584_v57  ;;  %v1583_v3 = vld [vmem:[#allocation6 + $0x30] sm:$0xff]  ;;  %v1582_v4 = vld [vmem:[#allocation6 + $0x28] sm:$0xff] }
  0x32   : > { %640 = vmatpush.bf16.msra.mxu0 %v1329_v21  ;;  %v545_v58 = vld [vmem:[%s2073_s2] sm:$0x3]  ;;  %v1580_v6 = vld [vmem:[#allocation6 + $0x18] sm:$0xff]  ;;  %v1579_v7 = vld [vmem:[#allocation6 + $0x10] sm:$0xff] }
  0x33   : > { %739 = vmatpush.bf16.msra.mxu2 %v1573_v31  ;;  %v547_v60 = vperm.slane %v545_v58, 0  ;;  %v1581_v5 = vld [vmem:[#allocation6 + $0x20] sm:$0xff]  ;;  %v1578_v8 = vld [vmem:[#allocation6 + $0x8] sm:$0xff]  ;;  %v1592_v10 = vld [vmem:[#allocation7 + $0x38] sm:$0xff]  ;;  %v548_v15 = vperm.slane %v545_v58, 1 }
  0x34   : > { %654 = vmatpush.bf16.msra.mxu1 %v1333_v32  ;;  %v1577_v9 = vld [vmem:[#allocation6] sm:$0xff]  ;;  %v1591_v11 = vld [vmem:[#allocation7 + $0x30] sm:$0xff]  ;;  %v1590_v13 = vld [vmem:[#allocation7 + $0x28] sm:$0xff] }
  0x35   : > { %833 = vmatpush.bf16.msra.mxu3 %v1583_v3  ;;  %v1685_v12 = vld [vmem:[%s2075_s4] ss:$0 sm:$0xff]  ;;  %v1588_v35 = vld [vmem:[#allocation7 + $0x18] sm:$0xff]  ;;  %v1586_v37 = vld [vmem:[#allocation7 + $0x8] sm:$0xff] }
  0x36   : > { %641 = vmatpush.bf16.msra.mxu0 %v1321_v28  ;;  %v1589_v18 = vld [vmem:[#allocation7 + $0x20] sm:$0xff]  ;;  %v1607_v41 = vld [vmem:[#allocation9 + $0x74] sm:$0xf]  ;;  %v1606_v45 = vld [vmem:[#allocation9 + $0x64] sm:$0xf0] }
  0x37   : > { %740 = vmatpush.bf16.msra.mxu2 %v1572_v44  ;;  %v1585_v38 = vld [vmem:[#allocation7] sm:$0xff]  ;;  %v1603_v53 = vld [vmem:[#allocation9 + $0x54] sm:$0xf]  ;;  %v1498_v54 = vld [vmem:[#allocation9 + $0x58] sm:$0xf0] }
  0x38   : > { %655 = vmatpush.bf16.msra.mxu1 %v1325_v43  ;;  %v1514_v43 = vld [vmem:[#allocation9 + $0x78] sm:$0xf0]  ;;  %v1504_v44 = vld [vmem:[#allocation9 + $0x60] sm:$0xf]  ;;  %v1601_v3 = vld [vmem:[#allocation9 + $0x44] sm:$0xf] }
  0x39   : > { %834 = vmatpush.bf16.msra.mxu3 %v1582_v4  ;;  %v1517_v46 = vor.u32 %v1607_v41, %v1514_v43  ;;  %v1505_v49 = vor.u32 %v1606_v45, %v1504_v44  ;;  %v1686_v58 = vld [vmem:[%s2077_s6] ss:$0 sm:$0xff] }
  0x3a   : > { %642 = vmatpush.bf16.msra.mxu0 %v1313_v33 }
  0x3b   : > { %741 = vmatpush.bf16.msra.mxu2 %v1571_v48  ;;  %v1506_v48 = vld [vmem:[#allocation9 + $0x68] sm:$0xf0] }
  0x3c   : > { %656 = vmatpush.bf16.msra.mxu1 %v1317_v47  ;;  %v1605_v47 = vld [vmem:[#allocation9 + $0x64] sm:$0xf] }
  0x3d   : > { %835 = vmatpush.bf16.msra.mxu3 %v1581_v5  ;;  %v1509_v50 = vor.u32 %v1605_v47, %v1506_v48  ;;  %v1490_v5 = vld [vmem:[#allocation9 + $0x48] sm:$0xf0] }
  0x3e   : > { %643 = vmatpush.bf16.msra.mxu0 %v1305_v36  ;;  %v1587_v36 = vld [vmem:[#allocation7 + $0x10] sm:$0xff] }
  0x3f   : > { %742 = vmatpush.bf16.msra.mxu2 %v1570_v52  ;;  %v1604_v52 = vld [vmem:[#allocation9 + $0x54] sm:$0xf0] }
  0x40   : > { %657 = vmatpush.bf16.msra.mxu1 %v1309_v51  ;;  %v1496_v51 = vld [vmem:[#allocation9 + $0x50] sm:$0xf] }
  0x41   : > { %836 = vmatpush.bf16.msra.mxu3 %v1580_v6  ;;  %v1493_v6 = vor.u32 %v1601_v3, %v1490_v5 }
  0x42   : > { %644 = vmatpush.bf16.msra.mxu0 %v1297_v39  ;;  %v1512_v39 = vld [vmem:[#allocation9 + $0x70] sm:$0xf] }
  0x43   : > { %743 = vmatpush.bf16.msra.mxu2 %v1569_v56  ;;  %v1501_v56 = vor.u32 %v1603_v53, %v1498_v54  ;;  %v956_v53 = vld [vmem:[%s2081_s10] sm:$0x3] }
  0x44   : > { %658 = vmatpush.bf16.msra.mxu1 %v1301_v55  ;;  %v1497_v55 = vor.u32 %v1604_v52, %v1496_v51  ;;  %v1612_v51 = vld [vmem:[%s2082_s11 + $0x18] sm:$0xff]  ;;  %v1609_v52 = vld [vmem:[%s2082_s11] sm:$0xff] }
  0x45   : > { %645 = vmatmul.bf16.vlgmr.msra.gmra.mxu0 %v1552_v40  ;;  %837 = vmatpush.bf16.msra.mxu3 %v1579_v7  ;;  %v1480_v7 = vld [vmem:[#allocation9 + $0x30] sm:$0xf] }
  0x46   : > { %919 = vmatpush.bf16.msrb.mxu0 %v1592_v10 }
  0x47   : > { %659 = vmatmul.bf16.vlgmr.msra.gmra.mxu1 %v1552_v40  ;;  %v1608_v40 = vld [vmem:[#allocation9 + $0x74] sm:$0xf0]  ;;  %1056 = vmatpush.bf16.msrb.mxu2 %v1517_v46 }
  0x48   : > { %v1513_v42 = vor.u32 %v1608_v40, %v1512_v39 }
  0x49   : > { %838 = vmatpush.bf16.msra.mxu3 %v1578_v8  ;;  %v1600_v8 = vld [vmem:[#allocation9 + $0x34] sm:$0xf0] }
  0x4a   : > { %920 = vmatpush.bf16.msrb.mxu0 %v1591_v11  ;;  %1042 = vmatpush.bf16.msrb.mxu1 %v1513_v42  ;;  %v1481_v10 = vor.u32 %v1600_v8, %v1480_v7  ;;  %v1482_v11 = vld [vmem:[#allocation9 + $0x38] sm:$0xf0] }
  0x4b   : > { %1057 = vmatpush.bf16.msrb.mxu2 %v1509_v50 }
  0x4d   : > { %839 = vmatpush.bf16.msra.mxu3 %v1577_v9  ;;  %v1599_v9 = vld [vmem:[#allocation9 + $0x34] sm:$0xf] }
  0x4e   : > { %921 = vmatpush.bf16.msrb.mxu0 %v1590_v13  ;;  %1043 = vmatpush.bf16.msrb.mxu1 %v1505_v49  ;;  %v1472_v13 = vld [vmem:[#allocation9 + $0x20] sm:$0xf] }
  0x4f   : > { %1058 = vmatpush.bf16.msrb.mxu2 %v1501_v56 }
  0x52   : > { %922 = vmatpush.bf16.msrb.mxu0 %v1589_v18  ;;  %1044 = vmatpush.bf16.msrb.mxu1 %v1497_v55  ;;  %v958_v55 = vperm.slane %v956_v53, 0 }
  0x53   : > { %1059 = vmatpush.bf16.msrb.mxu2 %v1493_v6 }
  0x56   : > { %923 = vmatpush.bf16.msrb.mxu0 %v1588_v35  ;;  %v1614_v35 = vld [vmem:[%s2082_s11 + $0x28] sm:$0xff] }
  0x5a   : > { %924 = vmatpush.bf16.msrb.mxu0 %v1587_v36  ;;  %v1613_v36 = vld [vmem:[%s2082_s11 + $0x20] sm:$0xff] }
  0x5e   : > { %925 = vmatpush.bf16.msrb.mxu0 %v1586_v37  ;;  %v1687_v37 = vld [vmem:[%s2079_s8] ss:$0 sm:$0xff] }
  0x62   : > { %926 = vmatpush.bf16.msrb.mxu0 %v1585_v38 }
  0xc2   : > { %v646_v59 = vpop.f32.mrf.mxu0 }
  0xc3   : > { %v647_v61 = vadd.f32 %v646_v59, %v547_v60 }
  0xc4   : > { %v660_v14 = vpop.f32.mrf.mxu1 }
  0xc5   : > { %v665_v0 = vmax.f32 %v647_v61, 0.0  ;;  %v661_v19 = vadd.f32 %v660_v14, %v548_v15  ;;  %v1598_v14 = vld [vmem:[#allocation9 + $0x24] sm:$0xf0] }
  0xca   : > { %v648_v62 = vpop.f32.mrf.mxu0 }
  0xcb   : > { %v649_v63 = vadd.f32 %v648_v62, %v547_v60 }
  0xcc   : > { %v662_v22 = vpop.f32.mrf.mxu1 }
  0xcd   : > { %v666_v1 = vmax.f32 %v649_v63, 0.0  ;;  %v663_v26 = vadd.f32 %v662_v22, %v548_v15  ;;  %v1597_v15 = vld [vmem:[#allocation9 + $0x24] sm:$0xf] }
  0xcf   : > { %v667_v2 = vpack.c.bf16 %v666_v1, %v665_v0  ;;  %v1488_v1 = vld [vmem:[#allocation9 + $0x40] sm:$0xf] }
  0xd1   : > { %744 = vmatmul.bf16.vlgmr.msra.gmra.mxu2 %v667_v2  ;;  %v1602_v2 = vld [vmem:[#allocation9 + $0x44] sm:$0xf0] }
  0xd2   : > { %v1489_v4 = vor.u32 %v1602_v2, %v1488_v1  ;;  %v959_v2 = vperm.slane %v956_v53, 1 }
  0xd4   : > { %1045 = vmatpush.bf16.msrb.mxu1 %v1489_v4 }
  0xd8   : > { %1046 = vmatpush.bf16.msrb.mxu1 %v1481_v10 }
 0x154   : > { %v745_v16 = vpop.f32.mrf.mxu2 }
 0x155   : > { %v746_v17 = vadd.f32 %v1685_v12, %v745_v16  ;;  %v1473_v16 = vor.u32 %v1598_v14, %v1472_v13 }
 0x157   : > { %v750_v20 = vmax.f32 %v746_v17, 0.0  ;;  %v1474_v17 = vld [vmem:[#allocation9 + $0x28] sm:$0xf0]  ;;  %1047 = vmatpush.bf16.msrb.mxu1 %v1473_v16 }
 0x158   : > { %v1477_v18 = vor.u32 %v1597_v15, %v1474_v17 }
 0x159   : > { %v752_v21 = vadd.f32 %v750_v20, %v661_v19  ;;  %v1464_v19 = vld [vmem:[#allocation9 + $0x10] sm:$0xf]  ;;  %v1596_v20 = vld [vmem:[#allocation9 + $0x14] sm:$0xf0] }
 0x15a   : > { %v1465_v22 = vor.u32 %v1596_v20, %v1464_v19 }
 0x15b   : > { %v754_v25 = vmax.f32 %v752_v21, 0.0  ;;  %v1595_v21 = vld [vmem:[#allocation9 + $0x14] sm:$0xf] }
 0x15c   : > { %v747_v23 = vpop.f32.mrf.mxu2  ;;  %1048 = vmatpush.bf16.msrb.mxu1 %v1465_v22 }
 0x15d   : > { %v748_v24 = vadd.f32 %v1685_v12, %v747_v23  ;;  %v2019_v29 = vpack.c.bf16 %v754_v25, %v754_v25  ;;  %v1485_v12 = vor.u32 %v1599_v9, %v1482_v11  ;;  %v1466_v23 = vld [vmem:[#allocation9 + $0x18] sm:$0xf0]  ;;  %v1456_v25 = vld [vmem:[#allocation9] sm:$0xf] }
 0x15f   : > { %v751_v27 = vmax.f32 %v748_v24, 0.0  ;;  %v780_v32 = vunpack.c.l.b16 %v2019_v29  ;;  %1060 = vmatpush.bf16.msrb.mxu2 %v1485_v12  ;;  %v1469_v24 = vor.u32 %v1595_v21, %v1466_v23  ;;  %v848_v42 = vunpack.c.l.bf16 %v2019_v29  ;;  %v1611_v29 = vld [vmem:[%s2082_s11 + $0x10] sm:$0xff] }
 0x161   : > { %v753_v28 = vadd.f32 %v751_v27, %v663_v26  ;;  %v1594_v26 = vld [vmem:[#allocation9 + $0x4] sm:$0xf0]  ;;  %v1593_v27 = vld [vmem:[#allocation9 + $0x4] sm:$0xf] }
 0x163   : > { %v755_v30 = vmax.f32 %v753_v28, 0.0  ;;  %1061 = vmatpush.bf16.msrb.mxu2 %v1477_v18  ;;  %v1457_v28 = vor.u32 %v1594_v26, %v1456_v25 }
 0x165   : > { %v2021_v31 = vpack.c.bf16 %v755_v30, %v755_v30  ;;  %v1458_v30 = vld [vmem:[#allocation9 + $0x8] sm:$0xf0]  ;;  %1049 = vmatpush.bf16.msrb.mxu1 %v1457_v28 }
 0x167   : > { %v781_v33 = vunpack.c.l.b16 %v2021_v31  ;;  %1062 = vmatpush.bf16.msrb.mxu2 %v1469_v24  ;;  %v849_v45 = vunpack.c.l.bf16 %v2021_v31  ;;  %v1610_v31 = vld [vmem:[%s2082_s11 + $0x8] sm:$0xff] }
 0x169   : > { %v782_v34 = vpack.c.b16 %v781_v33, %v780_v32  ;;  %v1461_v32 = vor.u32 %v1593_v27, %v1458_v30  ;;  %v1616_v33 = vld [vmem:[%s2082_s11 + $0x38] sm:$0xff] }
 0x16a   : > { %1141 = vmatpush.bf16.msrb.mxu3 %v1616_v33 }
 0x16b   : > { %840 = vmatmul.bf16.vlgmr.msra.gmra.mxu3 %v782_v34  ;;  %1063 = vmatpush.bf16.msrb.mxu2 %v1461_v32  ;;  %v1615_v34 = vld [vmem:[%s2082_s11 + $0x30] sm:$0xff] }
 0x16e   : > { %1142 = vmatpush.bf16.msrb.mxu3 %v1615_v34 }
 0x172   : > { %1143 = vmatpush.bf16.msrb.mxu3 %v1614_v35 }
 0x176   : > { %1144 = vmatpush.bf16.msrb.mxu3 %v1613_v36 }
 0x17a   : > { %1145 = vmatpush.bf16.msrb.mxu3 %v1612_v51 }
 0x17e   : > { %1146 = vmatpush.bf16.msrb.mxu3 %v1611_v29 }
 0x182   : > { %1147 = vmatpush.bf16.msrb.mxu3 %v1610_v31 }
 0x186   : > { %1148 = vmatpush.bf16.msrb.mxu3 %v1609_v52 }
 0x1ee   : > { %v841_v57 = vpop.f32.mrf.mxu3 }
 0x1ef   : > { %v842_v59 = vadd.f32 %v1686_v58, %v841_v57 }
 0x1f1   : > { %v846_v62 = vmax.f32 %v842_v59, 0.0 }
 0x1f6   : > { %v843_v60 = vpop.f32.mrf.mxu3 }
 0x1f7   : > { %v844_v61 = vadd.f32 %v1686_v58, %v843_v60 }
 0x1f9   : > { %v847_v63 = vmax.f32 %v844_v61, 0.0 }
 0x1fb   : > { %v850_v0 = vpack.c.bf16 %v847_v63, %v846_v62  ;;  %v1688_v63 = vld [vmem:[%s2083_s12] ss:$0 sm:$0xff] }
 0x1fd   : > { %927 = vmatmul.bf16.vlgmr.msrb.gmra.mxu0 %v850_v0 }
 0x27a   : > { %v928_v38 = vpop.f32.mrf.mxu0 }
 0x27b   : > { %v929_v39 = vadd.f32 %v1687_v37, %v928_v38 }
 0x27d   : > { %v933_v40 = vmax.f32 %v929_v39, 0.0 }
 0x27f   : > { %v935_v44 = vadd.f32 %v933_v40, %v848_v42 }
 0x281   : > { %v937_v48 = vmax.f32 %v935_v44, 0.0 }
 0x282   : > { %v930_v41 = vpop.f32.mrf.mxu0 }
 0x283   : > { %v931_v43 = vadd.f32 %v1687_v37, %v930_v41 }
 0x285   : > { %v934_v46 = vmax.f32 %v931_v43, 0.0 }
 0x287   : > { %v936_v47 = vadd.f32 %v934_v46, %v849_v45 }
 0x289   : > { %v938_v49 = vmax.f32 %v936_v47, 0.0 }
 0x28b   : > { %v939_v50 = vpack.c.bf16 %v938_v49, %v937_v48 }
 0x28d   : > { %1050 = vmatmul.bf16.vlgmr.msrb.gmra.mxu1 %v939_v50  ;;  %1064 = vmatmul.bf16.vlgmr.msrb.gmra.mxu2 %v939_v50 }
 0x30a   : > { %v1051_v54 = vpop.f32.mrf.mxu1 }
 0x30b   : > { %v1052_v56 = vadd.f32 %v1051_v54, %v958_v55 }
 0x30d   : > { %v1070_v59 = vmax.f32 %v1052_v56, 0.0 }
 0x310   : > { %v1065_v62 = vpop.f32.mrf.mxu2 }
 0x311   : > { %v1066_v6 = vadd.f32 %v1065_v62, %v959_v2 }
 0x312   : > { %v1053_v57 = vpop.f32.mrf.mxu1 }
 0x313   : > { %v1054_v58 = vadd.f32 %v1053_v57, %v958_v55 }
 0x315   : > { %v1071_v60 = vmax.f32 %v1054_v58, 0.0 }
 0x317   : > { %v1072_v61 = vpack.c.bf16 %v1071_v60, %v1070_v59 }
 0x318   : > { %v1067_v4 = vpop.f32.mrf.mxu2 }
 0x319   : > { %1149 = vmatmul.bf16.vlgmr.msrb.gmra.mxu3 %v1072_v61  ;;  %v1068_v8 = vadd.f32 %v1067_v4, %v959_v2 }
 0x39c   : > { %v1150_v0 = vpop.f32.mrf.mxu3 }
 0x39d   : > { %v1151_v1 = vadd.f32 %v1688_v63, %v1150_v0 }
 0x39f   : > { %v1155_v3 = vmax.f32 %v1151_v1, 0.0 }
 0x3a1   : > { %v1157_v9 = vadd.f32 %v1155_v3, %v1066_v6 }
 0x3a3   : > { %v1159_v12 = vmax.f32 %v1157_v9, 0.0 }
 0x3a4   : > { %v1152_v5 = vpop.f32.mrf.mxu3 }
 0x3a5   : > { %v1153_v7 = vadd.f32 %v1688_v63, %v1152_v5 }
 0x3a7   : > { %v1156_v10 = vmax.f32 %v1153_v7, 0.0 }
 0x3a9   : > { %v1158_v11 = vadd.f32 %v1156_v10, %v1068_v8 }
 0x3ab   : > { %v1160_v13 = vmax.f32 %v1158_v11, 0.0 }
 0x3ad   : > { %v1620_v14 = vpack.c.bf16 %v1160_v13, %v1159_v12 }
 0x3af   : > { %1621 = vst [vmem:[%s525_s1] sm:$0xff] %v1620_v14  }
 0x3b0 PF: > { %s26_s25 = sadd.s32 1, %s1857_s25  }
 0x3b1   : > { %p23_p7 = scmp.ge.s32.totalorder %s26_s25, 4  }
 0x3b3   :  { %25 = sbr.rel (!%p23_p7) target bundleno = 7 (0x7), region = 123 }
 0x3b8   :  { %1187 = vsyncpa [#allocation3], 1 }
 0x3b9   :  { %1189 = vsyncpa [#allocation3 + $0x1], 1 }
 0x3ba   :  { %1190 = vsyncpa [#allocation5], 1 }
 0x3bb   :  { %1191 = vsyncpa [#allocation8], 1 }

</bundles_post_ra>
